<compile_context>
chip_gen: v6e
topology: v6e:2x2x1
jax: 0.10.0
libtpu: 0.0.40
codegen_flags: <defaults>
</compile_context>

<pallas_src>
import jax
import jax.numpy as jnp
from jax.experimental import pallas as pl
from jax.experimental.pallas import tpu as pltpu

# ----------------------------- configuration -------------------------------
PATHWAYS = ["p0", "p1"]      # P = 2
CLUSTERS = ["c0", "c1"]      # C = 2
P = len(PATHWAYS)
C = len(CLUSTERS)
E = P * C                    # number of experts = gating output dim
LATENT_DIM = 32              # small latent dim for the test
N_CLASS = 2
HIDDEN_DIM = (128, 64)       # Encoder hidden dims (module default)
LEAKY_SLOPE = 0.2
GATE_IN = E * LATENT_DIM     # gating network input dim (= 128 here)
LANES = 128                  # lane-dense padding width for tails / output
NEG_MASK = -1e30             # softmax mask for padded lanes


def _round_up(n, m):
    return ((n + m - 1) // m) * m


# ------------------------------- kernel ------------------------------------
def moe_kernel(
    x_ref,                      # (TB, GATE_IN) f32  concatenated expert reps
    w1_ref, b1_ref,             # gating L1: (GATE_IN,128) bf16, (1,128) f32
    w2_ref, b2_ref,             # gating L2: (128,64)    bf16, (1,64)  f32
    w3_ref, b3_ref,             # gating L3 padded: (64,LANES) f32, (1,LANES) f32 (-1e30 mask)
    sel_ref,                    # (LANES, GATE_IN) f32  gate-col -> repeated-lane selection (i*j map)
    wh_ref, bh_ref,             # head folded: (GATE_IN, LANES) f32, (1, LANES) f32 (-1e30 mask)
    out_ref,                    # (TB, LANES) f32  [classif probs | surv=1.0 | zeros]
):
    x = x_ref[...]                                    # already f32

    def leaky(v):
        return jnp.where(v >= 0.0, v, LEAKY_SLOPE * v)

    def softmax_lanes(v):
        m = jnp.max(v, axis=-1, keepdims=True)
        e = jnp.exp(v - m)
        return e * pl.reciprocal(jnp.sum(e, axis=-1, keepdims=True), approx=True)

    # ---- gating encoder (classification branch), bf16 MXU / f32 accumulate ----
    h1 = leaky(jnp.dot(x.astype(jnp.bfloat16), w1_ref[...],
                       preferred_element_type=jnp.float32) + b1_ref[...])
    h2 = leaky(jnp.dot(h1.astype(jnp.bfloat16), w2_ref[...],
                       preferred_element_type=jnp.float32) + b2_ref[...])
    # Layer 3 padded to 128 lanes; padded columns carry a -1e30 bias so the
    # 128-lane softmax equals the softmax over the E real gate columns.
    gate_logits = jnp.dot(h2, w3_ref[...],
                          preferred_element_type=jnp.float32) + b3_ref[...]
    gates = softmax_lanes(gate_logits)                # (TB, LANES); cols >= E are 0

    # ---- expert mixing + classification head, fully lane-dense ----
    # g_rep[:, lanes of expert (i,j)] = gates[:, i*j]  (selection matmul,
    # reproduces the reference `i * j` indexing).
    g_rep = jnp.dot(gates, sel_ref[...], preferred_element_type=jnp.float32)
    y = x * g_rep                                     # (TB, GATE_IN)
    # wh tiles cls_w across the E expert row-blocks => dot == mix @ cls_w;
    # columns >= N_CLASS are zero-weight with -1e30 bias (softmax mask).
    head_logits = jnp.dot(y, wh_ref[...],
                          preferred_element_type=jnp.float32) + bh_ref[...]
    cls_probs = softmax_lanes(head_logits)            # cols 0..N_CLASS-1 = classif, rest 0

    # ---- survival head: Softmax over a size-1 dim == 1.0 (constant-folded) ----
    col = jax.lax.broadcasted_iota(jnp.int32, cls_probs.shape, 1)
    out_ref[...] = cls_probs + jnp.where(col == N_CLASS, 1.0, 0.0).astype(jnp.float32)


# --------------------- derived kernel operands (host side) -------------------
def _prepare_kernel_operands(params):
    (gc_w1, gc_b1, gc_w2, gc_b2, gc_w3, gc_b3,
     _gs_w1, _gs_b1, _gs_w2, _gs_b2, _gs_w3, _gs_b3,
     cls_w, cls_b, _srv_w, _srv_b, _bn_scale, _bn_shift) = params
    # Survival-branch params (_gs_*, _srv_*, _bn_*) are dead w.r.t. the outputs
    # (size-1 softmax == 1) and are intentionally not sent to the kernel.

    # Gating layer 3 padded to LANES output columns, -1e30 mask bias.
    w3p = jnp.zeros((HIDDEN_DIM[1], LANES), jnp.float32).at[:, :E].set(gc_w3)
    b3p = jnp.full((1, LANES), NEG_MASK, jnp.float32).at[:, :E].set(gc_b3)

    # Selection matrix: gate column (i*j) -> the LATENT_DIM lanes of expert (i,j).
    sel = jnp.zeros((LANES, GATE_IN), jnp.float32)
    for i in range(P):
        for j in range(C):
            e_idx = i * C + j
            g_idx = i * j                       # faithful reproduction of `i * j`
            sel = sel.at[g_idx, e_idx * LATENT_DIM:(e_idx + 1) * LATENT_DIM].add(1.0)

    # Classification head tiled over the E expert row-blocks, padded to LANES.
    wh = jnp.zeros((GATE_IN, LANES), jnp.float32)
    for e_idx in range(E):
        wh = wh.at[e_idx * LATENT_DIM:(e_idx + 1) * LATENT_DIM, :N_CLASS].set(cls_w)
    bh = jnp.full((1, LANES), NEG_MASK, jnp.float32).at[:, :N_CLASS].set(cls_b)

    return (gc_w1.astype(jnp.bfloat16), gc_b1,
            gc_w2.astype(jnp.bfloat16), gc_b2,
            w3p, b3p, sel, wh, bh)


# ------------------------------- wrapper ------------------------------------
def moe_forward(multimodal_rep, params, *, tile_b=512):
    """multimodal_rep: dict[pathway][cluster] -> (B, LATENT_DIM) arrays."""
    reps = [multimodal_rep[p][c] for p in PATHWAYS for c in CLUSTERS]
    x = jnp.concatenate(reps, axis=1)                 # (B, GATE_IN)
    if x.dtype != jnp.float32:
        x = x.astype(jnp.float32)
    batch = x.shape[0]

    ops = _prepare_kernel_operands(params)

    # Batch grid: tile rows (multiple of 8 sublanes), weights stay resident.
    tb = min(tile_b, _round_up(batch, 8))
    b_pad = _round_up(batch, tb)
    if b_pad != batch:
        x = jnp.pad(x, ((0, b_pad - batch), (0, 0)))
    n_tiles = b_pad // tb

    x_spec = pl.BlockSpec((tb, GATE_IN), lambda t: (t, 0))
    const_specs = [pl.BlockSpec(a.shape, lambda t: (0, 0)) for a in ops]

    out_slab = pl.pallas_call(
        moe_kernel,
        out_shape=jax.ShapeDtypeStruct((b_pad, LANES), jnp.float32),
        grid_spec=pltpu.PrefetchScalarGridSpec(
            num_scalar_prefetch=0,
            grid=(n_tiles,),
            in_specs=[x_spec] + const_specs,
            out_specs=pl.BlockSpec((tb, LANES), lambda t: (t, 0)),
        ),
        compiler_params=pltpu.CompilerParams(
            dimension_semantics=("parallel",)),
    )(x, *ops)

    classif = out_slab[:batch, :N_CLASS]
    surv = out_slab[:batch, N_CLASS:N_CLASS + 1]      # identically 1.0
    return classif, surv


# --------------------------- parameter creation ------------------------------
def _init_linear(key, in_dim, out_dim):
    kw, kb = jax.random.split(key)
    bound = 1.0 / (in_dim ** 0.5)
    w = jax.random.uniform(kw, (in_dim, out_dim), jnp.float32, -bound, bound)
    b = jax.random.uniform(kb, (1, out_dim), jnp.float32, -bound, bound)
    return w, b


def make_params(key):
    keys = jax.random.split(key, 8)
    # gating network (classif): E*D -> 128 -> 64 -> E
    gc_w1, gc_b1 = _init_linear(keys[0], GATE_IN, HIDDEN_DIM[0])
    gc_w2, gc_b2 = _init_linear(keys[1], HIDDEN_DIM[0], HIDDEN_DIM[1])
    gc_w3, gc_b3 = _init_linear(keys[2], HIDDEN_DIM[1], E)
    # gating network (survival): separate parameters, same shapes (dead code)
    gs_w1, gs_b1 = _init_linear(keys[3], GATE_IN, HIDDEN_DIM[0])
    gs_w2, gs_b2 = _init_linear(keys[4], HIDDEN_DIM[0], HIDDEN_DIM[1])
    gs_w3, gs_b3 = _init_linear(keys[5], HIDDEN_DIM[1], E)
    # classification head: D -> n_class
    cls_w, cls_b = _init_linear(keys[6], LATENT_DIM, N_CLASS)
    # survival head: D -> 1 (dead code)
    srv_w, srv_b = _init_linear(keys[7], LATENT_DIM, 1)
    # eval-mode BatchNorm1d(1): gamma=1, beta=0, running_mean=0, running_var=1
    eps = 1e-5
    bn_scale = jnp.full((1, 1), 1.0 / (1.0 + eps) ** 0.5, jnp.float32)
    bn_shift = jnp.zeros((1, 1), jnp.float32)
    return (gc_w1, gc_b1, gc_w2, gc_b2, gc_w3, gc_b3,
            gs_w1, gs_b1, gs_w2, gs_b2, gs_w3, gs_b3,
            cls_w, cls_b, srv_w, srv_b, bn_scale, bn_shift)


# --------------------------- pure-JAX reference -------------------------------
def moe_reference(multimodal_rep, params):
    (gc_w1, gc_b1, gc_w2, gc_b2, gc_w3, gc_b3,
     gs_w1, gs_b1, gs_w2, gs_b2, gs_w3, gs_b3,
     cls_w, cls_b, srv_w, srv_b, bn_scale, bn_shift) = params
    reps = [multimodal_rep[p][c] for p in PATHWAYS for c in CLUSTERS]
    x = jnp.concatenate(reps, axis=1)

    def leaky(v):
        return jnp.where(v >= 0.0, v, LEAKY_SLOPE * v)

    def enc(w1, b1, w2, b2, w3, b3):
        h1 = leaky(x @ w1 + b1)
        h2 = leaky(h1 @ w2 + b2)
        return h2 @ w3 + b3

    wc = jax.nn.softmax(enc(gc_w1, gc_b1, gc_w2, gc_b2, gc_w3, gc_b3), axis=1)
    ws = jax.nn.softmax(enc(gs_w1, gs_b1, gs_w2, gs_b2, gs_w3, gs_b3), axis=1)
    mix_c = 0.0
    mix_s = 0.0
    for i in range(P):
        for j in range(C):
            e_idx = i * C + j
            rep = x[:, e_idx * LATENT_DIM:(e_idx + 1) * LATENT_DIM]
            mix_c = mix_c + wc[:, i * j][:, None] * rep
            mix_s = mix_s + ws[:, i * j][:, None] * rep
    classif = jax.nn.softmax(mix_c @ cls_w + cls_b, axis=1)
    z = (mix_s @ srv_w + srv_b) * bn_scale + bn_shift
    surv = jax.nn.softmax(z, axis=1)                  # size-1 softmax -> ones
    return classif, surv


# --------------------------------- main --------------------------------------
if __name__ == "__main__":
    key = jax.random.PRNGKey(0)
    key_params, key_data = jax.random.split(key)

    params = make_params(key_params)

    # Build multimodal_rep: dict[pathway][cluster] -> (B, LATENT_DIM)
    batch = 8
    data_keys = jax.random.split(key_data, E)
    multimodal_rep = {}
    k_idx = 0
    for p in PATHWAYS:
        multimodal_rep[p] = {}
        for c in CLUSTERS:
            multimodal_rep[p][c] = jax.random.normal(
                data_keys[k_idx], (batch, LATENT_DIM), jnp.float32)
            k_idx += 1

    classif_result, surv_result = moe_forward(multimodal_rep, params)
    jax.block_until_ready((classif_result, surv_result))

    assert classif_result.shape == (batch, N_CLASS)
    assert surv_result.shape == (batch, 1)

    ref_classif, ref_surv = moe_reference(multimodal_rep, params)
    assert jnp.allclose(classif_result, ref_classif, atol=2e-2, rtol=0.0), (
        float(jnp.max(jnp.abs(classif_result - ref_classif))))
    assert jnp.allclose(surv_result, ref_surv, atol=1e-6), (
        float(jnp.max(jnp.abs(surv_result - ref_surv))))

    print("KERNEL_OK")
</pallas_src>

<mosaic_0001>
module attributes {stable_mosaic.version = 11 : i64} {
  func.func @moe_kernel(%arg0: i32, %arg1: memref<8x128xf32, #tpu.memory_space<vmem>>, %arg2: memref<128x128xbf16, #tpu.memory_space<vmem>>, %arg3: memref<1x128xf32, #tpu.memory_space<vmem>>, %arg4: memref<128x64xbf16, #tpu.memory_space<vmem>>, %arg5: memref<1x64xf32, #tpu.memory_space<vmem>>, %arg6: memref<64x128xf32, #tpu.memory_space<vmem>>, %arg7: memref<1x128xf32, #tpu.memory_space<vmem>>, %arg8: memref<128x128xf32, #tpu.memory_space<vmem>>, %arg9: memref<128x128xf32, #tpu.memory_space<vmem>>, %arg10: memref<1x128xf32, #tpu.memory_space<vmem>>, %arg11: memref<8x128xf32, #tpu.memory_space<vmem>>) attributes {dimension_semantics = [#tpu.dimension_semantics<parallel>], iteration_bounds = array<i64: 1>, scalar_prefetch = 0 : i64, scratch_operands = 0 : i64, tpu.core_type = #tpu.core_type<tc>, window_params = [{transform_indices = @transform_0, window_bounds = array<i64: 8, 128>}, {pipeline_mode = #tpu.pipeline_mode<synchronous>, transform_indices = @transform_1, window_bounds = array<i64: 128, 128>}, {pipeline_mode = #tpu.pipeline_mode<synchronous>, transform_indices = @transform_2, window_bounds = array<i64: 1, 128>}, {pipeline_mode = #tpu.pipeline_mode<synchronous>, transform_indices = @transform_3, window_bounds = array<i64: 128, 64>}, {pipeline_mode = #tpu.pipeline_mode<synchronous>, transform_indices = @transform_4, window_bounds = array<i64: 1, 64>}, {pipeline_mode = #tpu.pipeline_mode<synchronous>, transform_indices = @transform_5, window_bounds = array<i64: 64, 128>}, {pipeline_mode = #tpu.pipeline_mode<synchronous>, transform_indices = @transform_6, window_bounds = array<i64: 1, 128>}, {pipeline_mode = #tpu.pipeline_mode<synchronous>, transform_indices = @transform_7, window_bounds = array<i64: 128, 128>}, {pipeline_mode = #tpu.pipeline_mode<synchronous>, transform_indices = @transform_8, window_bounds = array<i64: 128, 128>}, {pipeline_mode = #tpu.pipeline_mode<synchronous>, transform_indices = @transform_9, window_bounds = array<i64: 1, 128>}, {transform_indices = @transform_10, window_bounds = array<i64: 8, 128>}]} {
    %c0 = arith.constant 0 : index
    %c0_0 = arith.constant 0 : index
    %0 = vector.load %arg1[%c0, %c0_0] : memref<8x128xf32, #tpu.memory_space<vmem>>, vector<8x128xf32>
    %1 = arith.truncf %0 : vector<8x128xf32> to vector<8x128xbf16>
    %c0_1 = arith.constant 0 : index
    %c0_2 = arith.constant 0 : index
    %2 = vector.load %arg2[%c0_1, %c0_2] : memref<128x128xbf16, #tpu.memory_space<vmem>>, vector<128x128xbf16>
    %cst = arith.constant dense<0.000000e+00> : vector<8x128xf32>
    %3 = tpu.matmul %1, %2, %cst {dimension_numbers = #tpu.dot_dimension_numbers<[1], [0], [0], [1], [0, 0, 1, 1], [], []>} : vector<8x128xbf16>, vector<128x128xbf16>, vector<8x128xf32> -> vector<8x128xf32>
    %c0_3 = arith.constant 0 : index
    %c0_4 = arith.constant 0 : index
    %4 = vector.load %arg3[%c0_3, %c0_4] : memref<1x128xf32, #tpu.memory_space<vmem>>, vector<1x128xf32>
    %5 = vector.broadcast %4 : vector<1x128xf32> to vector<8x128xf32>
    %6 = arith.addf %3, %5 : vector<8x128xf32>
    %cst_5 = arith.constant 0.000000e+00 : f32
    %7 = vector.broadcast %cst_5 : f32 to vector<8x128xf32>
    %8 = arith.cmpf oge, %6, %7 : vector<8x128xf32>
    %cst_6 = arith.constant 2.000000e-01 : f32
    %9 = vector.broadcast %cst_6 : f32 to vector<8x128xf32>
    %10 = arith.mulf %9, %6 : vector<8x128xf32>
    %11 = arith.select %8, %6, %10 : vector<8x128xi1>, vector<8x128xf32>
    %12 = arith.truncf %11 : vector<8x128xf32> to vector<8x128xbf16>
    %c0_7 = arith.constant 0 : index
    %c0_8 = arith.constant 0 : index
    %13 = vector.load %arg4[%c0_7, %c0_8] : memref<128x64xbf16, #tpu.memory_space<vmem>>, vector<128x64xbf16>
    %cst_9 = arith.constant dense<0.000000e+00> : vector<8x64xf32>
    %14 = tpu.matmul %12, %13, %cst_9 {dimension_numbers = #tpu.dot_dimension_numbers<[1], [0], [0], [1], [0, 0, 1, 1], [], []>} : vector<8x128xbf16>, vector<128x64xbf16>, vector<8x64xf32> -> vector<8x64xf32>
    %c0_10 = arith.constant 0 : index
    %c0_11 = arith.constant 0 : index
    %15 = vector.load %arg5[%c0_10, %c0_11] : memref<1x64xf32, #tpu.memory_space<vmem>>, vector<1x64xf32>
    %16 = vector.broadcast %15 : vector<1x64xf32> to vector<8x64xf32>
    %17 = arith.addf %14, %16 : vector<8x64xf32>
    %cst_12 = arith.constant 0.000000e+00 : f32
    %18 = vector.broadcast %cst_12 : f32 to vector<8x64xf32>
    %19 = arith.cmpf oge, %17, %18 : vector<8x64xf32>
    %cst_13 = arith.constant 2.000000e-01 : f32
    %20 = vector.broadcast %cst_13 : f32 to vector<8x64xf32>
    %21 = arith.mulf %20, %17 : vector<8x64xf32>
    %22 = arith.select %19, %17, %21 : vector<8x64xi1>, vector<8x64xf32>
    %c0_14 = arith.constant 0 : index
    %c0_15 = arith.constant 0 : index
    %23 = vector.load %arg6[%c0_14, %c0_15] : memref<64x128xf32, #tpu.memory_space<vmem>>, vector<64x128xf32>
    %cst_16 = arith.constant dense<0.000000e+00> : vector<8x128xf32>
    %24 = tpu.matmul %22, %23, %cst_16 {dimension_numbers = #tpu.dot_dimension_numbers<[1], [0], [0], [1], [0, 0, 1, 1], [], []>} : vector<8x64xf32>, vector<64x128xf32>, vector<8x128xf32> -> vector<8x128xf32>
    %c0_17 = arith.constant 0 : index
    %c0_18 = arith.constant 0 : index
    %25 = vector.load %arg7[%c0_17, %c0_18] : memref<1x128xf32, #tpu.memory_space<vmem>>, vector<1x128xf32>
    %26 = vector.broadcast %25 : vector<1x128xf32> to vector<8x128xf32>
    %27 = arith.addf %24, %26 : vector<8x128xf32>
    %cst_19 = arith.constant dense<0xFF800000> : vector<8xf32>
    %28 = vector.multi_reduction <maximumf>, %27, %cst_19 [1] : vector<8x128xf32> to vector<8xf32>
    %29 = vector.shape_cast %28 : vector<8xf32> to vector<8x1xf32>
    %30 = vector.broadcast %29 : vector<8x1xf32> to vector<8x128xf32>
    %31 = arith.subf %27, %30 : vector<8x128xf32>
    %32 = math.exp %31 : vector<8x128xf32>
    %cst_20 = arith.constant dense<0.000000e+00> : vector<8xf32>
    %33 = vector.multi_reduction <add>, %32, %cst_20 [1] : vector<8x128xf32> to vector<8xf32>
    %34 = vector.shape_cast %33 : vector<8xf32> to vector<8x1xf32>
    %35 = tpu.reciprocal %34 {approx = true} : vector<8x1xf32> -> vector<8x1xf32>
    %36 = vector.broadcast %35 : vector<8x1xf32> to vector<8x128xf32>
    %37 = arith.mulf %32, %36 : vector<8x128xf32>
    %c0_21 = arith.constant 0 : index
    %c0_22 = arith.constant 0 : index
    %38 = vector.load %arg8[%c0_21, %c0_22] : memref<128x128xf32, #tpu.memory_space<vmem>>, vector<128x128xf32>
    %cst_23 = arith.constant dense<0.000000e+00> : vector<8x128xf32>
    %39 = tpu.matmul %37, %38, %cst_23 {dimension_numbers = #tpu.dot_dimension_numbers<[1], [0], [0], [1], [0, 0, 1, 1], [], []>} : vector<8x128xf32>, vector<128x128xf32>, vector<8x128xf32> -> vector<8x128xf32>
    %40 = arith.mulf %0, %39 : vector<8x128xf32>
    %c0_24 = arith.constant 0 : index
    %c0_25 = arith.constant 0 : index
    %41 = vector.load %arg9[%c0_24, %c0_25] : memref<128x128xf32, #tpu.memory_space<vmem>>, vector<128x128xf32>
    %cst_26 = arith.constant dense<0.000000e+00> : vector<8x128xf32>
    %42 = tpu.matmul %40, %41, %cst_26 {dimension_numbers = #tpu.dot_dimension_numbers<[1], [0], [0], [1], [0, 0, 1, 1], [], []>} : vector<8x128xf32>, vector<128x128xf32>, vector<8x128xf32> -> vector<8x128xf32>
    %c0_27 = arith.constant 0 : index
    %c0_28 = arith.constant 0 : index
    %43 = vector.load %arg10[%c0_27, %c0_28] : memref<1x128xf32, #tpu.memory_space<vmem>>, vector<1x128xf32>
    %44 = vector.broadcast %43 : vector<1x128xf32> to vector<8x128xf32>
    %45 = arith.addf %42, %44 : vector<8x128xf32>
    %cst_29 = arith.constant dense<0xFF800000> : vector<8xf32>
    %46 = vector.multi_reduction <maximumf>, %45, %cst_29 [1] : vector<8x128xf32> to vector<8xf32>
    %47 = vector.shape_cast %46 : vector<8xf32> to vector<8x1xf32>
    %48 = vector.broadcast %47 : vector<8x1xf32> to vector<8x128xf32>
    %49 = arith.subf %45, %48 : vector<8x128xf32>
    %50 = math.exp %49 : vector<8x128xf32>
    %cst_30 = arith.constant dense<0.000000e+00> : vector<8xf32>
    %51 = vector.multi_reduction <add>, %50, %cst_30 [1] : vector<8x128xf32> to vector<8xf32>
    %52 = vector.shape_cast %51 : vector<8xf32> to vector<8x1xf32>
    %53 = tpu.reciprocal %52 {approx = true} : vector<8x1xf32> -> vector<8x1xf32>
    %54 = vector.broadcast %53 : vector<8x1xf32> to vector<8x128xf32>
    %55 = arith.mulf %50, %54 : vector<8x128xf32>
    %56 = tpu.iota {dimensions = array<i32: 1>} : vector<8x128xi32>
    %c2_i32 = arith.constant 2 : i32
    %57 = vector.broadcast %c2_i32 : i32 to vector<8x128xi32>
    %58 = arith.cmpi eq, %56, %57 : vector<8x128xi32>
    %cst_31 = arith.constant 1.000000e+00 : f32
    %cst_32 = arith.constant 0.000000e+00 : f32
    %59 = vector.broadcast %cst_31 : f32 to vector<8x128xf32>
    %60 = vector.broadcast %cst_32 : f32 to vector<8x128xf32>
    %61 = arith.select %58, %59, %60 : vector<8x128xi1>, vector<8x128xf32>
    %62 = arith.addf %55, %61 : vector<8x128xf32>
    %c0_33 = arith.constant 0 : index
    %c0_34 = arith.constant 0 : index
    %63 = vector.load %arg11[%c0_33, %c0_34] : memref<8x128xf32, #tpu.memory_space<vmem>>, vector<8x128xf32>
    tpu.vector_store %arg11[%c0_33, %c0_34], %62 {strides = array<i32>} : memref<8x128xf32, #tpu.memory_space<vmem>>, vector<8x128xf32>,
    return
  }
  func.func @transform_0(%arg0: i32) -> (i32, i32) {
    %c0_i32 = arith.constant 0 : i32
    %c0_i32_0 = arith.constant 0 : i32
    return %arg0, %c0_i32 : i32, i32
  }
  func.func @transform_1(%arg0: i32) -> (i32, i32) {
    %c0_i32 = arith.constant 0 : i32
    %c0_i32_0 = arith.constant 0 : i32
    %c0_i32_1 = arith.constant 0 : i32
    return %c0_i32, %c0_i32_0 : i32, i32
  }
  func.func @transform_2(%arg0: i32) -> (i32, i32) {
    %c0_i32 = arith.constant 0 : i32
    %c0_i32_0 = arith.constant 0 : i32
    %c0_i32_1 = arith.constant 0 : i32
    return %c0_i32, %c0_i32_0 : i32, i32
  }
  func.func @transform_3(%arg0: i32) -> (i32, i32) {
    %c0_i32 = arith.constant 0 : i32
    %c0_i32_0 = arith.constant 0 : i32
    %c0_i32_1 = arith.constant 0 : i32
    return %c0_i32, %c0_i32_0 : i32, i32
  }
  func.func @transform_4(%arg0: i32) -> (i32, i32) {
    %c0_i32 = arith.constant 0 : i32
    %c0_i32_0 = arith.constant 0 : i32
    %c0_i32_1 = arith.constant 0 : i32
    return %c0_i32, %c0_i32_0 : i32, i32
  }
  func.func @transform_5(%arg0: i32) -> (i32, i32) {
    %c0_i32 = arith.constant 0 : i32
    %c0_i32_0 = arith.constant 0 : i32
    %c0_i32_1 = arith.constant 0 : i32
    return %c0_i32, %c0_i32_0 : i32, i32
  }
  func.func @transform_6(%arg0: i32) -> (i32, i32) {
    %c0_i32 = arith.constant 0 : i32
    %c0_i32_0 = arith.constant 0 : i32
    %c0_i32_1 = arith.constant 0 : i32
    return %c0_i32, %c0_i32_0 : i32, i32
  }
  func.func @transform_7(%arg0: i32) -> (i32, i32) {
    %c0_i32 = arith.constant 0 : i32
    %c0_i32_0 = arith.constant 0 : i32
    %c0_i32_1 = arith.constant 0 : i32
    return %c0_i32, %c0_i32_0 : i32, i32
  }
  func.func @transform_8(%arg0: i32) -> (i32, i32) {
    %c0_i32 = arith.constant 0 : i32
    %c0_i32_0 = arith.constant 0 : i32
    %c0_i32_1 = arith.constant 0 : i32
    return %c0_i32, %c0_i32_0 : i32, i32
  }
  func.func @transform_9(%arg0: i32) -> (i32, i32) {
    %c0_i32 = arith.constant 0 : i32
    %c0_i32_0 = arith.constant 0 : i32
    %c0_i32_1 = arith.constant 0 : i32
    return %c0_i32, %c0_i32_0 : i32, i32
  }
  func.func @transform_10(%arg0: i32) -> (i32, i32) {
    %c0_i32 = arith.constant 0 : i32
    %c0_i32_0 = arith.constant 0 : i32
    return %arg0, %c0_i32 : i32, i32
  }
}

</mosaic_0001>

<bundles_post_ra>
// kernel: tpu_custom_call.1
= control target key start
LH: loop header
LB: loop body
LE: loop exit
PB: predicated region body
PF: predicated region fallthrough
CT: control target
= control target key end

     0   :  { %15 = vsyncpa [#allocation3], 0  ;;  %s1161_s0 = inlined_call_operand.vmem [shape: f32[8,128], index: 0, kind: input, shape index: {}]   ;;  %s1162_s1 = inlined_call_operand.vmem [shape: bf16[128,128], index: 1, kind: input, shape index: {}]   ;;  %s1163_s2 = inlined_call_operand.vmem [shape: f32[1,128], index: 2, kind: input, shape index: {}]   ;;  %s1164_s3 = inlined_call_operand.vmem [shape: bf16[128,64], index: 3, kind: input, shape index: {}]   ;;  %s1165_s4 = inlined_call_operand.vmem [shape: f32[1,64], index: 4, kind: input, shape index: {}]   ;;  %s1166_s5 = inlined_call_operand.hbm [shape: f32[64,128], index: 5, kind: input, shape index: {}]   ;;  %s1167_s6 = inlined_call_operand.vmem [shape: f32[1,128], index: 6, kind: input, shape index: {}]   ;;  %s1168_s7 = inlined_call_operand.hbm [shape: f32[128,128], index: 7, kind: input, shape index: {}]   ;;  %s1169_s8 = inlined_call_operand.hbm [shape: f32[128,128], index: 8, kind: input, shape index: {}]   ;;  %s1170_s9 = inlined_call_operand.vmem [shape: f32[1,128], index: 9, kind: input, shape index: {}]   ;;  %s1171_s10 = inlined_call_operand.hbm [shape: f32[8,128], index: 10, kind: output, shape index: {}]  }
   0x1   :  { %16 = vsyncpa [#allocation6], 0 }
   0x2   :  { %17 = vsyncpa [#allocation4], 0  ;;  %s947_s13 = smov [#allocation5]   ;;  %s948_s15 = smov [#allocation2]  }
   0x3   :  { %s47_s14 = sshll.u32 %s947_s13, 4  ;;  %s33_s16 = sshll.u32 %s948_s15, 4  ;;  %s48_s14 = int_to_ptr.vmem [resolvable:$true] %s47_s14  ;;  %s34_s16 = int_to_ptr.vmem [resolvable:$true] %s33_s16 }
   0x4   :  { %s869_s17 = scalar_lea.vmem %s48_s14, 2048  ;;  %p874_p1 = scmp.lt.s32.totalorder %s48_s14, %s48_s14 }
   0x5   :  { %p870_p0 = scmp.ne.s32.totalorder %s48_s14, %s869_s17  ;;  %p875_p2 = scmp.lt.s32.totalorder %s869_s17, %s869_s17 }
   0x7   :  { %p876_p3 = por %p875_p2, %p874_p1 }
   0x9   :  { %p877_p4 = pnand %p876_p3, %p870_p0 }
   0xb   :  { %880 = shalt.err (!%p877_p4)
}
   0xc   :  { %s949_s18 = smov 128   ;;  %s950_s19 = smov 8  }
   0xd   :  { %53 = dma.hbm_to_vmem [thread:$0]  %s1168_s7, 2048, %s48_s14, [#allocation6], %s949_s18, %s949_s18, %s950_s19  }
   0xe   :  { %s889_s22 = scalar_lea.vmem %s34_s16, 1024  ;;  %p894_p6 = scmp.lt.s32.totalorder %s34_s16, %s34_s16 }
   0xf   :  { %p890_p5 = scmp.ne.s32.totalorder %s34_s16, %s889_s22  ;;  %p895_p7 = scmp.lt.s32.totalorder %s889_s22, %s889_s22 }
  0x11   :  { %p896_p8 = por %p895_p7, %p894_p6 }
  0x13   :  { %p897_p9 = pnand %p896_p8, %p890_p5 }
  0x15   :  { %900 = shalt.err (!%p897_p9)
}
  0x16   :  { %39 = dma.hbm_to_vmem [thread:$0]  %s1166_s5, 1024, %s34_s16, [#allocation3], %s949_s18, %s949_s18, %s950_s19  }
  0x17   :  { %s951_s25 = smov [#allocation7]  }
  0x18   :  { %s59_s26 = sshll.u32 %s951_s25, 4  ;;  %s60_s26 = int_to_ptr.vmem [resolvable:$true] %s59_s26 }
  0x19   :  { %s909_s27 = scalar_lea.vmem %s60_s26, 2048  ;;  %p914_p11 = scmp.lt.s32.totalorder %s60_s26, %s60_s26 }
  0x1a   :  { %p910_p10 = scmp.ne.s32.totalorder %s60_s26, %s909_s27  ;;  %p915_p12 = scmp.lt.s32.totalorder %s909_s27, %s909_s27 }
  0x1c   :  { %p916_p13 = por %p915_p12, %p914_p11 }
  0x1e   :  { %p917_p0 = pnand %p916_p13, %p910_p10 }
  0x20   :  { %920 = shalt.err (!%p917_p0)
}
  0x21   :  { %65 = dma.hbm_to_vmem [thread:$0]  %s1169_s8, 2048, %s60_s26, [#allocation6], %s949_s18, %s949_s18, %s950_s19  }
  0x22   :  { %941 = dma.done.wait [#allocation3], 1024  }
  0x23   :  { %942 = vsyncadd [#allocation3], 4294966272 }
  0x24   :  { %943 = dma.done.wait [#allocation6], 4096  }
  0x25   :  { %944 = vsyncadd [#allocation6], 4294963200  ;;  %v952_v0 = vmov 0.0   ;;  %vm953_vm0 = vmmov 0   ;;  %v837_v1 = vld [vmem:[%s1162_s1 + $0x38] sm:$0xff]   ;;  %v838_v2 = vld [vmem:[%s1162_s1 + $0x30] sm:$0xff]  }
  0x26   :  { %700 = vmatprep.subr.bf16.mxu0 %v952_v0  ;;  %716 = vmatprep.mubr.msk.bf16.mxu0 %vm953_vm0, %v952_v0  ;;  %v839_v3 = vld [vmem:[%s1162_s1 + $0x28] sm:$0xff]   ;;  %v845_v4 = vld [vmem:[%s1164_s3 + $0x38] sm:$0xff]   ;;  %v840_v5 = vld [vmem:[%s1162_s1 + $0x20] sm:$0xff]   ;;  %vm324_vm3 = vcmask 523264   ;;  %s954_s20 = smov [#allocation8]  }
  0x27   :  { %720 = vmatprep.subr.bf16.mxu1 %v952_v0  ;;  %736 = vmatprep.mubr.msk.bf16.mxu1 %vm953_vm0, %v952_v0  ;;  %v846_v6 = vld [vmem:[%s1164_s3 + $0x30] sm:$0xff]   ;;  %v841_v7 = vld [vmem:[%s1162_s1 + $0x18] sm:$0xff]   ;;  %v847_v8 = vld [vmem:[%s1164_s3 + $0x28] sm:$0xff]  }
  0x28   :  { %701 = vmatpush3.bf16.msra.mxu0 %v837_v1  ;;  %721 = vmatpush3.bf16.msra.mxu1 %v845_v4  ;;  %v842_v9 = vld [vmem:[%s1162_s1 + $0x10] sm:$0xff]   ;;  %v848_v10 = vld [vmem:[%s1164_s3 + $0x20] sm:$0xff]   ;;  %v843_v11 = vld [vmem:[%s1162_s1 + $0x8] sm:$0xff]  }
  0x29   :  { %702 = vmatprep.subr.bf16.mxu0 %v952_v0  ;;  %722 = vmatprep.subr.bf16.mxu1 %v952_v0  ;;  %v849_v12 = vld [vmem:[%s1164_s3 + $0x18] sm:$0xff]   ;;  %v844_v13 = vld [vmem:[%s1162_s1] sm:$0xff]   ;;  %v850_v15 = vld [vmem:[%s1164_s3 + $0x10] sm:$0xff]  }
  0x2a   :  { %v1077_v14 = vld [vmem:[%s1161_s0] sm:$0xff]  ;;  %v851_v17 = vld [vmem:[%s1164_s3 + $0x8] sm:$0xff]   ;;  %v316_v19 = vld [vmem:[#allocation2 + $0x38] sm:$0xff] }
  0x2b   :  { %v79_v16 = vpack.c.bf16 %v1077_v14, %v1077_v14  ;;  %v852_v18 = vld [vmem:[%s1164_s3] sm:$0xff]   ;;  %v315_v20 = vld [vmem:[#allocation2 + $0x30] sm:$0xff]  ;;  %v314_v21 = vld [vmem:[#allocation2 + $0x28] sm:$0xff] }
  0x2c   :  { %703 = vmatpush3.bf16.msra.mxu0 %v838_v2  ;;  %723 = vmatpush3.bf16.msra.mxu1 %v846_v6  ;;  %v313_v22 = vld [vmem:[#allocation2 + $0x20] sm:$0xff]  ;;  %v312_v23 = vld [vmem:[#allocation2 + $0x18] sm:$0xff]  ;;  %v311_v33 = vld [vmem:[#allocation2 + $0x10] sm:$0xff] }
  0x2d   :  { %704 = vmatprep.subr.bf16.mxu0 %v952_v0  ;;  %724 = vmatprep.subr.bf16.mxu1 %v952_v0  ;;  %v618_v24 = vld [vmem:[%s1163_s2] ss:$0 sm:$0xff]  ;;  %v310_v34 = vld [vmem:[#allocation2 + $0x8] sm:$0xff]  ;;  %v422_v48 = vld [vmem:[#allocation5 + $0x78] sm:$0xff] }
  0x2e   :  { %v309_v35 = vld [vmem:[#allocation2] sm:$0xff]  ;;  %v421_v49 = vld [vmem:[#allocation5 + $0x70] sm:$0xff]  ;;  %v420_v50 = vld [vmem:[#allocation5 + $0x68] sm:$0xff] }
  0x2f   :  { %v627_v36 = vld [vmem:[%s1165_s4] ss:$0 sm:$0xff]  ;;  %v418_v52 = vld [vmem:[#allocation5 + $0x58] sm:$0xff]  ;;  %v417_v53 = vld [vmem:[#allocation5 + $0x50] sm:$0xff] }
  0x30   :  { %705 = vmatpush3.bf16.msra.mxu0 %v839_v3  ;;  %725 = vmatpush3.bf16.msra.mxu1 %v847_v8  ;;  %v636_v44 = vld [vmem:[%s1167_s6] ss:$0 sm:$0xff]  ;;  %v416_v54 = vld [vmem:[#allocation5 + $0x48] sm:$0xff]  ;;  %v414_v60 = vld [vmem:[#allocation5 + $0x38] sm:$0xff] }
  0x31   :  { %706 = vmatprep.subr.bf16.mxu0 %v952_v0  ;;  %726 = vmatprep.subr.bf16.mxu1 %v952_v0  ;;  %v419_v51 = vld [vmem:[#allocation5 + $0x60] sm:$0xff]  ;;  %v413_v61 = vld [vmem:[#allocation5 + $0x30] sm:$0xff]  ;;  %v412_v62 = vld [vmem:[#allocation5 + $0x28] sm:$0xff] }
  0x32   :  { %v415_v55 = vld [vmem:[#allocation5 + $0x40] sm:$0xff]  ;;  %v410_v1 = vld [vmem:[#allocation5 + $0x18] sm:$0xff]  ;;  %v409_v2 = vld [vmem:[#allocation5 + $0x10] sm:$0xff] }
  0x33   :  { %v411_v63 = vld [vmem:[#allocation5 + $0x20] sm:$0xff]  ;;  %v408_v3 = vld [vmem:[#allocation5 + $0x8] sm:$0xff]  ;;  %v508_v6 = vld [vmem:[#allocation7 + $0x70] sm:$0xff] }
  0x34   :  { %707 = vmatpush3.bf16.msra.mxu0 %v840_v5  ;;  %727 = vmatpush3.bf16.msra.mxu1 %v848_v10  ;;  %v407_v4 = vld [vmem:[#allocation5] sm:$0xff]  ;;  %v509_v5 = vld [vmem:[#allocation7 + $0x78] sm:$0xff]  ;;  %v504_v10 = vld [vmem:[#allocation7 + $0x50] sm:$0xff] }
  0x35   :  { %708 = vmatprep.subr.bf16.mxu0 %v952_v0  ;;  %728 = vmatprep.subr.bf16.mxu1 %v952_v0  ;;  %v506_v8 = vld [vmem:[#allocation7 + $0x60] sm:$0xff] }
  0x38   :  { %709 = vmatpush3.bf16.msra.mxu0 %v841_v7  ;;  %729 = vmatpush3.bf16.msra.mxu1 %v849_v12  ;;  %v507_v7 = vld [vmem:[#allocation7 + $0x68] sm:$0xff]  ;;  %v502_v12 = vld [vmem:[#allocation7 + $0x40] sm:$0xff] }
  0x39   :  { %710 = vmatprep.subr.bf16.mxu0 %v952_v0  ;;  %730 = vmatprep.subr.bf16.mxu1 %v952_v0 }
  0x3c   :  { %711 = vmatpush3.bf16.msra.mxu0 %v842_v9  ;;  %731 = vmatpush3.bf16.msra.mxu1 %v850_v15  ;;  %v505_v9 = vld [vmem:[#allocation7 + $0x58] sm:$0xff]  ;;  %v500_v15 = vld [vmem:[#allocation7 + $0x30] sm:$0xff] }
  0x3d   :  { %712 = vmatprep.subr.bf16.mxu0 %v952_v0  ;;  %732 = vmatprep.subr.bf16.mxu1 %v952_v0 }
  0x40   :  { %713 = vmatpush3.bf16.msra.mxu0 %v843_v11  ;;  %733 = vmatpush3.bf16.msra.mxu1 %v851_v17  ;;  %v503_v11 = vld [vmem:[#allocation7 + $0x48] sm:$0xff]  ;;  %v498_v17 = vld [vmem:[#allocation7 + $0x20] sm:$0xff] }
  0x41   :  { %714 = vmatprep.subr.bf16.mxu0 %v952_v0  ;;  %734 = vmatprep.subr.bf16.mxu1 %v952_v0 }
  0x44   :  { %715 = vmatpush3.bf16.msra.mxu0 %v844_v13  ;;  %735 = vmatpush3.bf16.msra.mxu1 %v852_v18  ;;  %v501_v13 = vld [vmem:[#allocation7 + $0x38] sm:$0xff] }
  0x45   :  { %740 = vmatprep.subr.mxu0 %v952_v0  ;;  %759 = vmatprep.subr.mxu1 %v952_v0  ;;  %v497_v18 = vld [vmem:[#allocation7 + $0x18] sm:$0xff] }
  0x47   :  { %717 = vmatmul.mubr.bf16.vlgmr.msra.gmra.mxu0 %v79_v16  ;;  %v499_v16 = vld [vmem:[#allocation7 + $0x28] sm:$0xff] }
  0x48   :  { %756 = vmatprep.mubr.msk.f32.mxu0 %vm953_vm0, %v952_v0  ;;  %741 = vmatpush3.msra.mxu0 %v316_v19  ;;  %v496_v19 = vld [vmem:[#allocation7 + $0x10] sm:$0xff] }
  0x49   :  { %742 = vmatprep.subr.mxu0 %v952_v0 }
  0x4a   :  { %743 = vmatpush3.msra.mxu0 %v315_v20 }
  0x4b   :  { %744 = vmatprep.subr.mxu0 %v952_v0 }
  0x4c   :  { %745 = vmatpush3.msra.mxu0 %v314_v21 }
  0x4d   :  { %746 = vmatprep.subr.mxu0 %v952_v0 }
  0x4e   :  { %747 = vmatpush3.msra.mxu0 %v313_v22 }
  0x4f   :  { %748 = vmatprep.subr.mxu0 %v952_v0 }
  0x50   :  { %749 = vmatpush3.msra.mxu0 %v312_v23  ;;  %v495_v23 = vld [vmem:[#allocation7 + $0x8] sm:$0xff] }
  0x51   :  { %750 = vmatprep.subr.mxu0 %v952_v0 }
  0x52   :  { %751 = vmatpush3.msra.mxu0 %v311_v33 }
  0x53   :  { %752 = vmatprep.subr.mxu0 %v952_v0 }
  0x54   :  { %753 = vmatpush3.msra.mxu0 %v310_v34 }
  0x55   :  { %754 = vmatprep.subr.mxu0 %v952_v0 }
  0x56   :  { %755 = vmatpush3.msra.mxu0 %v309_v35 }
  0x57   :  { %794 = vmatprep.subr.mxu0 %v952_v0 }
 0x107   :  { %v185_v25 = vpop.f32.mrf.mxu0 }
 0x108   :  { %v186_v26 = vadd.f32 %v618_v24, %v185_v25  ;;  %v494_v24 = vld [vmem:[#allocation7] sm:$0xff] }
 0x109   :  { %v718_v27 = vpop.f32.mrf.mxu0 }
 0x10a   :  { %vm191_vm1 = vcmp.ge.f32.partialorder %v186_v26, 0.0  ;;  %v192_v28 = vmul.f32 0.2, %v186_v26 }
 0x10b   :  { %v188_v29 = vpop.f32.mrf.mxu0 }
 0x10c   :  { %v193_v30 = vsel %vm191_vm1, %v186_v26, %v192_v28  ;;  %v638_v28 = vld [vmem:[%s1170_s9] ss:$0 sm:$0xff]  ;;  %s608_s9 = sshll.u32 %s954_s20, 4  ;;  %s609_s9 = int_to_ptr.vmem [resolvable:$true] %s608_s9 }
 0x10d   :  { %v719_v31 = vpop.f32.mrf.mxu0  ;;  %v194_v32 = vpack.c.bf16 %v193_v30, %v193_v30  ;;  %s921_s21 = scalar_lea.vmem %s609_s9, 128  ;;  %p926_p2 = scmp.lt.s32.totalorder %s609_s9, %s609_s9 }
 0x10e   :  { %p922_p1 = scmp.ne.s32.totalorder %s609_s9, %s921_s21  ;;  %p927_p3 = scmp.lt.s32.totalorder %s921_s21, %s921_s21 }
 0x10f   :  { %737 = vmatmul.mubr.bf16.vlgmr.msra.gmra.mxu1 %v194_v32 }
 0x110   :  { %791 = vmatprep.mubr.msk.f32.mxu1 %vm953_vm0, %v952_v0  ;;  %760 = vmatpush3.msra.mxu1 %v422_v48  ;;  %p928_p4 = por %p927_p3, %p926_p2 }
 0x111   :  { %761 = vmatprep.subr.mxu1 %v952_v0 }
 0x112   :  { %762 = vmatpush3.msra.mxu1 %v421_v49  ;;  %p929_p5 = pnand %p928_p4, %p922_p1 }
 0x113   :  { %763 = vmatprep.subr.mxu1 %v952_v0 }
 0x114   :  { %764 = vmatpush3.msra.mxu1 %v420_v50 }
 0x115   :  { %765 = vmatprep.subr.mxu1 %v952_v0 }
 0x116   :  { %766 = vmatpush3.msra.mxu1 %v419_v51 }
 0x117   :  { %767 = vmatprep.subr.mxu1 %v952_v0 }
 0x118   :  { %768 = vmatpush3.msra.mxu1 %v418_v52 }
 0x119   :  { %769 = vmatprep.subr.mxu1 %v952_v0 }
 0x11a   :  { %770 = vmatpush3.msra.mxu1 %v417_v53 }
 0x11b   :  { %771 = vmatprep.subr.mxu1 %v952_v0 }
 0x11c   :  { %772 = vmatpush3.msra.mxu1 %v416_v54 }
 0x11d   :  { %773 = vmatprep.subr.mxu1 %v952_v0 }
 0x11e   :  { %774 = vmatpush3.msra.mxu1 %v415_v55 }
 0x11f   :  { %775 = vmatprep.subr.mxu1 %v952_v0 }
 0x120   :  { %776 = vmatpush3.msra.mxu1 %v414_v60 }
 0x121   :  { %777 = vmatprep.subr.mxu1 %v952_v0 }
 0x122   :  { %778 = vmatpush3.msra.mxu1 %v413_v61 }
 0x123   :  { %779 = vmatprep.subr.mxu1 %v952_v0 }
 0x124   :  { %780 = vmatpush3.msra.mxu1 %v412_v62 }
 0x125   :  { %781 = vmatprep.subr.mxu1 %v952_v0 }
 0x126   :  { %782 = vmatpush3.msra.mxu1 %v411_v63 }
 0x127   :  { %783 = vmatprep.subr.mxu1 %v952_v0 }
 0x128   :  { %784 = vmatpush3.msra.mxu1 %v410_v1 }
 0x129   :  { %785 = vmatprep.subr.mxu1 %v952_v0 }
 0x12a   :  { %786 = vmatpush3.msra.mxu1 %v409_v2 }
 0x12b   :  { %787 = vmatprep.subr.mxu1 %v952_v0 }
 0x12c   :  { %788 = vmatpush3.msra.mxu1 %v408_v3 }
 0x12d   :  { %789 = vmatprep.subr.mxu1 %v952_v0 }
 0x12e   :  { %790 = vmatpush3.msra.mxu1 %v407_v4 }
 0x1cf   :  { %v300_v37 = vpop.f32.mrf.mxu1 }
 0x1d0   :  { %v301_v38 = vadd.f32 %v627_v36, %v300_v37  ;;  %v596_v37 = vlaneseq }
 0x1d1   :  { %v738_v39 = vpop.f32.mrf.mxu1 }
 0x1d2   :  { %vm306_vm2 = vcmp.ge.f32.partialorder %v301_v38, 0.0  ;;  %v307_v40 = vmul.f32 0.2, %v301_v38 }
 0x1d3   :  { %v303_v41 = vpop.f32.mrf.mxu1 }
 0x1d4   :  { %v308_v42 = vsel %vm306_vm2, %v301_v38, %v307_v40 }
 0x1d5   :  { %v739_v43 = vpop.f32.mrf.mxu1  ;;  %757 = vmatmul.mubr.msk.f32.vlgmr.msra.gmra.mxu0 %vm324_vm3, %v308_v42 }
 0x1d6   :  { %826 = vmatprep.mubr.msk.f32.mxu0 %vm953_vm0, %v952_v0  ;;  %795 = vmatpush3.msra.mxu0 %v509_v5 }
 0x1d7   :  { %796 = vmatprep.subr.mxu0 %v952_v0 }
 0x1d8   :  { %797 = vmatpush3.msra.mxu0 %v508_v6 }
 0x1d9   :  { %798 = vmatprep.subr.mxu0 %v952_v0 }
 0x1da   :  { %799 = vmatpush3.msra.mxu0 %v507_v7 }
 0x1db   :  { %800 = vmatprep.subr.mxu0 %v952_v0 }
 0x1dc   :  { %801 = vmatpush3.msra.mxu0 %v506_v8 }
 0x1dd   :  { %802 = vmatprep.subr.mxu0 %v952_v0 }
 0x1de   :  { %803 = vmatpush3.msra.mxu0 %v505_v9 }
 0x1df   :  { %804 = vmatprep.subr.mxu0 %v952_v0 }
 0x1e0   :  { %805 = vmatpush3.msra.mxu0 %v504_v10 }
 0x1e1   :  { %806 = vmatprep.subr.mxu0 %v952_v0 }
 0x1e2   :  { %807 = vmatpush3.msra.mxu0 %v503_v11 }
 0x1e3   :  { %808 = vmatprep.subr.mxu0 %v952_v0 }
 0x1e4   :  { %809 = vmatpush3.msra.mxu0 %v502_v12 }
 0x1e5   :  { %810 = vmatprep.subr.mxu0 %v952_v0 }
 0x1e6   :  { %811 = vmatpush3.msra.mxu0 %v501_v13 }
 0x1e7   :  { %812 = vmatprep.subr.mxu0 %v952_v0 }
 0x1e8   :  { %813 = vmatpush3.msra.mxu0 %v500_v15 }
 0x1e9   :  { %814 = vmatprep.subr.mxu0 %v952_v0 }
 0x1ea   :  { %815 = vmatpush3.msra.mxu0 %v499_v16 }
 0x1eb   :  { %816 = vmatprep.subr.mxu0 %v952_v0 }
 0x1ec   :  { %817 = vmatpush3.msra.mxu0 %v498_v17 }
 0x1ed   :  { %818 = vmatprep.subr.mxu0 %v952_v0 }
 0x1ee   :  { %819 = vmatpush3.msra.mxu0 %v497_v18 }
 0x1ef   :  { %820 = vmatprep.subr.mxu0 %v952_v0 }
 0x1f0   :  { %821 = vmatpush3.msra.mxu0 %v496_v19 }
 0x1f1   :  { %822 = vmatprep.subr.mxu0 %v952_v0 }
 0x1f2   :  { %823 = vmatpush3.msra.mxu0 %v495_v23 }
 0x1f3   :  { %824 = vmatprep.subr.mxu0 %v952_v0 }
 0x1f4   :  { %825 = vmatpush3.msra.mxu0 %v494_v24 }
 0x295   :  { %v394_v45 = vpop.f32.mrf.mxu0 }
 0x296   :  { %v395_v46 = vadd.f32 %v636_v44, %v394_v45 }
 0x297   :  { %v758_v47 = vpop.f32.mrf.mxu0 }
 0x298   :  { %398 = vmax.xlane.f32.xlu0 %v395_v46 }
 0x321   :  { %v399_v56 = vpop.xlane.xlu0 %398 }
 0x322   :  { %v400_v57 = vsub.f32 %v395_v46, %v399_v56 }
 0x324   :  { %v401_v58 = vmul.f32 1.442695, %v400_v57 }
 0x326   :  { %853 = vpow2.f32 %v401_v58 }
 0x333   :  { %v1127_v59 = vpop.eup %853 }
 0x334   :  { %403 = vadd.xlane.f32.xlu0 %v1127_v59 }
 0x3bd   :  { %v404_v20 = vpop.xlane.xlu0 %403 }
 0x3be   :  { %855 = vrcp.f32 %v404_v20 }
 0x3cb   :  { %v856_v21 = vpop.eup %855 }
 0x3cc   :  { %v406_v22 = vmul.f32 %v856_v21, %v1127_v59 }
 0x3ce   :  { %792 = vmatmul.mubr.f32.vlgmr.msra.gmra.mxu1 %v406_v22 }
 0x48e   :  { %v489_v25 = vpop.f32.mrf.mxu1 }
 0x48f   :  { %v493_v26 = vmul.f32 %v489_v25, %v1077_v14  ;;  %v597_v14 = vand.u32 127, %v596_v37 }
 0x490   :  { %v793_v27 = vpop.f32.mrf.mxu1 }
 0x491   :  { %827 = vmatmul.mubr.f32.vlgmr.msra.gmra.mxu0 %v493_v26  ;;  %vm598_vm4 = vcmp.eq.s32.totalorder %v597_v14, 2 }
 0x492   :  { %v599_v39 = vsel %vm598_vm4, 1.0, %v952_v0 }
 0x551   :  { %v583_v29 = vpop.f32.mrf.mxu0 }
 0x552   :  { %v584_v30 = vadd.f32 %v638_v28, %v583_v29 }
 0x553   :  { %v828_v31 = vpop.f32.mrf.mxu0 }
 0x554   :  { %587 = vmax.xlane.f32.xlu1 %v584_v30 }
 0x5dd   :  { %v588_v32 = vpop.xlane.xlu1 %587 }
 0x5de   :  { %v589_v33 = vsub.f32 %v584_v30, %v588_v32 }
 0x5e0   :  { %v590_v34 = vmul.f32 1.442695, %v589_v33 }
 0x5e2   :  { %857 = vpow2.f32 %v590_v34 }
 0x5ef   :  { %v858_v35 = vpop.eup %857 }
 0x5f0   :  { %592 = vadd.xlane.f32.xlu1 %v858_v35 }
 0x679   :  { %v593_v36 = vpop.xlane.xlu1 %592 }
 0x67a   :  { %859 = vrcp.f32 %v593_v36 }
 0x687   :  { %v860_v38 = vpop.eup %859 }
 0x688   :  { %v595_v40 = vmul.f32 %v860_v38, %v858_v35 }
 0x68a   :  { %v600_v41 = vadd.f32 %v599_v39, %v595_v40 }
 0x68c   :  { %601 = vst [vmem:[#allocation8] sm:$0xff] %v600_v41 }
 0x68d   :  { %932 = shalt.err (!%p929_p5)
}
 0x68e   :  { %611 = dma.vmem_to_hbm [thread:$0]  %s609_s9, 128, %s1171_s10, [#allocation4]  }
 0x68f   :  { %945 = dma.done.wait [#allocation4], 128  }
 0x690   :  { %946 = vsyncadd [#allocation4], 4294967168 }
 0x691   :  { %615 = vsyncpa [#allocation3], 1 }
 0x692   :  { %616 = vsyncpa [#allocation6], 1 }
 0x693   :  { %617 = vsyncpa [#allocation4], 1 }

</bundles_post_ra>
